<compile_context>
chip_gen: v7x
topology: tpu7x:2x2x1
jax: 0.10.0
libtpu: 0.0.40
codegen_flags: <defaults>
</compile_context>

<pallas_src>
import jax
import jax.numpy as jnp
import numpy as np
from jax.experimental import pallas as pl
from jax.experimental.pallas import tpu as pltpu


def _deception_kernel(x_ref,
                      w1_ref, b1_ref,
                      w2_ref, b2_ref,
                      w3_ref, b3_ref,
                      w4_ref, b4_ref,
                      out_ref):
    """Whole MLP (4 matmuls + biases + 3 ReLUs) on one [features, B_tile] tile.

    Weights are in PyTorch [out, in] layout; biases are [out, 1] columns, so
    everything broadcasts along the lane (batch) axis.
    """
    x = x_ref[...].astype(jnp.float32)                       # [input_dim, Bt]

    # encoder: Linear(input_dim, 8) + ReLU
    h = jnp.dot(w1_ref[...], x, preferred_element_type=jnp.float32) + b1_ref[...]
    h = jnp.maximum(h, 0.0)                                   # [8, Bt]
    # encoder: Linear(8, hidden_dim) + ReLU
    h = jnp.dot(w2_ref[...], h, preferred_element_type=jnp.float32) + b2_ref[...]
    h = jnp.maximum(h, 0.0)                                   # [hidden, Bt]
    # decoder: Linear(hidden_dim, 8) + ReLU
    h = jnp.dot(w3_ref[...], h, preferred_element_type=jnp.float32) + b3_ref[...]
    h = jnp.maximum(h, 0.0)                                   # [8, Bt]
    # decoder: Linear(8, input_dim)  (no activation)
    y = jnp.dot(w4_ref[...], h, preferred_element_type=jnp.float32) + b4_ref[...]

    out_ref[...] = y.astype(out_ref.dtype)                    # [input_dim, Bt]


def _const_spec(shape):
    """Full-array BlockSpec (same block every grid step -> DMA'd once)."""
    nd = len(shape)
    return pl.BlockSpec(tuple(shape), lambda i, _nd=nd: (0,) * _nd)


def deception_net_forward(x, params, *, batch_tile=512):
    """DeceptionNet forward via a single pallas_call, tiled over the batch.

    x: [B, input_dim] (f32 or bf16 — bf16 halves HBM traffic; math stays f32).
    params: ((w1, b1), ..., (w4, b4)) with w in PyTorch [out, in] layout and
            b as [out, 1] columns.
    batch_tile: rows per grid step; multiple of 128 (lane-dense layout).
    """
    (w1, b1), (w2, b2), (w3, b3), (w4, b4) = params
    B, input_dim = x.shape
    assert batch_tile % 128 == 0, "batch_tile must be a multiple of 128"

    # Transposed activation layout: batch on lanes.
    xT = jnp.transpose(x)                                     # [input_dim, B]
    n_tiles = pl.cdiv(B, batch_tile)
    B_pad = n_tiles * batch_tile
    if B_pad != B:
        xT = jnp.pad(xT, ((0, 0), (0, B_pad - B)))

    grid = (n_tiles,)

    outT = pl.pallas_call(
        _deception_kernel,
        out_shape=jax.ShapeDtypeStruct((input_dim, B_pad), x.dtype),
        grid_spec=pltpu.PrefetchScalarGridSpec(
            num_scalar_prefetch=0,
            grid=grid,
            in_specs=[
                pl.BlockSpec((input_dim, batch_tile), lambda i: (0, i)),
                _const_spec(w1.shape), _const_spec(b1.shape),
                _const_spec(w2.shape), _const_spec(b2.shape),
                _const_spec(w3.shape), _const_spec(b3.shape),
                _const_spec(w4.shape), _const_spec(b4.shape),
            ],
            out_specs=pl.BlockSpec((input_dim, batch_tile), lambda i: (0, i)),
        ),
        compiler_params=pltpu.CompilerParams(
            dimension_semantics=("parallel",),
        ),
    )(xT, w1, b1, w2, b2, w3, b3, w4, b4)

    # Back to [B, input_dim]; drop batch padding.
    return jnp.transpose(outT[:, :B])


def init_params(key, input_dim, hidden_dim, dtype=jnp.float32):
    """Deterministic init mimicking nn.Linear default (U(-1/sqrt(fan_in), +)).

    Weights are stored in PyTorch [out, in] layout; biases as [out, 1].
    """
    dims = [(input_dim, 8), (8, hidden_dim), (hidden_dim, 8), (8, input_dim)]
    params = []
    for (fan_in, fan_out) in dims:
        key, kw, kb = jax.random.split(key, 3)
        bound = 1.0 / np.sqrt(fan_in)
        w = jax.random.uniform(kw, (fan_out, fan_in), dtype, -bound, bound)
        b = jax.random.uniform(kb, (fan_out, 1), dtype, -bound, bound)
        params.append((w, b))
    return params


def deception_net_reference(x, params):
    """Pure-JAX reference for the correctness check."""
    h = x
    for layer, (w, b) in enumerate(params):
        h = h @ w.T + b.T
        if layer < 3:
            h = jnp.maximum(h, 0.0)
    return h


if __name__ == "__main__":
    key = jax.random.PRNGKey(0)
    k_x, k_p = jax.random.split(key)

    batch = 200          # deliberately not a multiple of the tile (tests padding)
    input_dim = 16
    hidden_dim = 32
    batch_tile = 128     # small test tile; use 512-2048 for production batches

    x = jax.random.normal(k_x, (batch, input_dim), jnp.float32)
    params = init_params(k_p, input_dim, hidden_dim)

    # f32 I/O path: exact match with the reference.
    out = deception_net_forward(x, params, batch_tile=batch_tile)
    out = jax.block_until_ready(out)
    ref = deception_net_reference(x, params)
    np.testing.assert_allclose(np.asarray(out), np.asarray(ref),
                               rtol=1e-5, atol=1e-5)

    # bf16 I/O path (memory-bound optimization): loose tolerance for the cast.
    x_bf16 = x.astype(jnp.bfloat16)
    out_bf = deception_net_forward(x_bf16, params, batch_tile=batch_tile)
    out_bf = jax.block_until_ready(out_bf)
    ref_bf = deception_net_reference(x_bf16.astype(jnp.float32), params)
    np.testing.assert_allclose(np.asarray(out_bf, dtype=np.float32),
                               np.asarray(ref_bf), rtol=2e-2, atol=2e-2)

    print("KERNEL_OK")
</pallas_src>

<mosaic_0001>
module attributes {stable_mosaic.version = 11 : i64} {
  func.func @_deception_kernel(%arg0: i32, %arg1: memref<16x128xf32, #tpu.memory_space<vmem>>, %arg2: memref<8x16xf32, #tpu.memory_space<vmem>>, %arg3: memref<8x1xf32, #tpu.memory_space<vmem>>, %arg4: memref<32x8xf32, #tpu.memory_space<vmem>>, %arg5: memref<32x1xf32, #tpu.memory_space<vmem>>, %arg6: memref<8x32xf32, #tpu.memory_space<vmem>>, %arg7: memref<8x1xf32, #tpu.memory_space<vmem>>, %arg8: memref<16x8xf32, #tpu.memory_space<vmem>>, %arg9: memref<16x1xf32, #tpu.memory_space<vmem>>, %arg10: memref<16x128xf32, #tpu.memory_space<vmem>>) attributes {dimension_semantics = [#tpu.dimension_semantics<parallel>], iteration_bounds = array<i64: 2>, scalar_prefetch = 0 : i64, scratch_operands = 0 : i64, tpu.core_type = #tpu.core_type<tc>, window_params = [{transform_indices = @transform_0, window_bounds = array<i64: 16, 128>}, {pipeline_mode = #tpu.pipeline_mode<synchronous>, transform_indices = @transform_1, window_bounds = array<i64: 8, 16>}, {pipeline_mode = #tpu.pipeline_mode<synchronous>, transform_indices = @transform_2, window_bounds = array<i64: 8, 1>}, {pipeline_mode = #tpu.pipeline_mode<synchronous>, transform_indices = @transform_3, window_bounds = array<i64: 32, 8>}, {pipeline_mode = #tpu.pipeline_mode<synchronous>, transform_indices = @transform_4, window_bounds = array<i64: 32, 1>}, {pipeline_mode = #tpu.pipeline_mode<synchronous>, transform_indices = @transform_5, window_bounds = array<i64: 8, 32>}, {pipeline_mode = #tpu.pipeline_mode<synchronous>, transform_indices = @transform_6, window_bounds = array<i64: 8, 1>}, {pipeline_mode = #tpu.pipeline_mode<synchronous>, transform_indices = @transform_7, window_bounds = array<i64: 16, 8>}, {pipeline_mode = #tpu.pipeline_mode<synchronous>, transform_indices = @transform_8, window_bounds = array<i64: 16, 1>}, {transform_indices = @transform_9, window_bounds = array<i64: 16, 128>}]} {
    %c0 = arith.constant 0 : index
    %c0_0 = arith.constant 0 : index
    %0 = vector.load %arg1[%c0, %c0_0] : memref<16x128xf32, #tpu.memory_space<vmem>>, vector<16x128xf32>
    %c0_1 = arith.constant 0 : index
    %c0_2 = arith.constant 0 : index
    %1 = vector.load %arg2[%c0_1, %c0_2] : memref<8x16xf32, #tpu.memory_space<vmem>>, vector<8x16xf32>
    %cst = arith.constant dense<0.000000e+00> : vector<8x128xf32>
    %2 = tpu.matmul %1, %0, %cst {dimension_numbers = #tpu.dot_dimension_numbers<[1], [0], [0], [1], [0, 0, 1, 1], [], []>} : vector<8x16xf32>, vector<16x128xf32>, vector<8x128xf32> -> vector<8x128xf32>
    %c0_3 = arith.constant 0 : index
    %c0_4 = arith.constant 0 : index
    %3 = vector.load %arg3[%c0_3, %c0_4] : memref<8x1xf32, #tpu.memory_space<vmem>>, vector<8x1xf32>
    %4 = vector.broadcast %3 : vector<8x1xf32> to vector<8x128xf32>
    %5 = arith.addf %2, %4 : vector<8x128xf32>
    %cst_5 = arith.constant 0.000000e+00 : f32
    %6 = vector.broadcast %cst_5 : f32 to vector<8x128xf32>
    %7 = arith.maximumf %5, %6 : vector<8x128xf32>
    %c0_6 = arith.constant 0 : index
    %c0_7 = arith.constant 0 : index
    %8 = vector.load %arg4[%c0_6, %c0_7] : memref<32x8xf32, #tpu.memory_space<vmem>>, vector<32x8xf32>
    %cst_8 = arith.constant dense<0.000000e+00> : vector<32x128xf32>
    %9 = tpu.matmul %8, %7, %cst_8 {dimension_numbers = #tpu.dot_dimension_numbers<[1], [0], [0], [1], [0, 0, 1, 1], [], []>} : vector<32x8xf32>, vector<8x128xf32>, vector<32x128xf32> -> vector<32x128xf32>
    %c0_9 = arith.constant 0 : index
    %c0_10 = arith.constant 0 : index
    %10 = vector.load %arg5[%c0_9, %c0_10] : memref<32x1xf32, #tpu.memory_space<vmem>>, vector<32x1xf32>
    %11 = vector.broadcast %10 : vector<32x1xf32> to vector<32x128xf32>
    %12 = arith.addf %9, %11 : vector<32x128xf32>
    %cst_11 = arith.constant 0.000000e+00 : f32
    %13 = vector.broadcast %cst_11 : f32 to vector<32x128xf32>
    %14 = arith.maximumf %12, %13 : vector<32x128xf32>
    %c0_12 = arith.constant 0 : index
    %c0_13 = arith.constant 0 : index
    %15 = vector.load %arg6[%c0_12, %c0_13] : memref<8x32xf32, #tpu.memory_space<vmem>>, vector<8x32xf32>
    %cst_14 = arith.constant dense<0.000000e+00> : vector<8x128xf32>
    %16 = tpu.matmul %15, %14, %cst_14 {dimension_numbers = #tpu.dot_dimension_numbers<[1], [0], [0], [1], [0, 0, 1, 1], [], []>} : vector<8x32xf32>, vector<32x128xf32>, vector<8x128xf32> -> vector<8x128xf32>
    %c0_15 = arith.constant 0 : index
    %c0_16 = arith.constant 0 : index
    %17 = vector.load %arg7[%c0_15, %c0_16] : memref<8x1xf32, #tpu.memory_space<vmem>>, vector<8x1xf32>
    %18 = vector.broadcast %17 : vector<8x1xf32> to vector<8x128xf32>
    %19 = arith.addf %16, %18 : vector<8x128xf32>
    %cst_17 = arith.constant 0.000000e+00 : f32
    %20 = vector.broadcast %cst_17 : f32 to vector<8x128xf32>
    %21 = arith.maximumf %19, %20 : vector<8x128xf32>
    %c0_18 = arith.constant 0 : index
    %c0_19 = arith.constant 0 : index
    %22 = vector.load %arg8[%c0_18, %c0_19] : memref<16x8xf32, #tpu.memory_space<vmem>>, vector<16x8xf32>
    %cst_20 = arith.constant dense<0.000000e+00> : vector<16x128xf32>
    %23 = tpu.matmul %22, %21, %cst_20 {dimension_numbers = #tpu.dot_dimension_numbers<[1], [0], [0], [1], [0, 0, 1, 1], [], []>} : vector<16x8xf32>, vector<8x128xf32>, vector<16x128xf32> -> vector<16x128xf32>
    %c0_21 = arith.constant 0 : index
    %c0_22 = arith.constant 0 : index
    %24 = vector.load %arg9[%c0_21, %c0_22] : memref<16x1xf32, #tpu.memory_space<vmem>>, vector<16x1xf32>
    %25 = vector.broadcast %24 : vector<16x1xf32> to vector<16x128xf32>
    %26 = arith.addf %23, %25 : vector<16x128xf32>
    %c0_23 = arith.constant 0 : index
    %c0_24 = arith.constant 0 : index
    %27 = vector.load %arg10[%c0_23, %c0_24] : memref<16x128xf32, #tpu.memory_space<vmem>>, vector<16x128xf32>
    tpu.vector_store %arg10[%c0_23, %c0_24], %26 {strides = array<i32>} : memref<16x128xf32, #tpu.memory_space<vmem>>, vector<16x128xf32>,
    return
  }
  func.func @transform_0(%arg0: i32) -> (i32, i32) {
    %c0_i32 = arith.constant 0 : i32
    %c0_i32_0 = arith.constant 0 : i32
    return %c0_i32, %arg0 : i32, i32
  }
  func.func @transform_1(%arg0: i32) -> (i32, i32) {
    %c0_i32 = arith.constant 0 : i32
    %c0_i32_0 = arith.constant 0 : i32
    %c0_i32_1 = arith.constant 0 : i32
    return %c0_i32, %c0_i32_0 : i32, i32
  }
  func.func @transform_2(%arg0: i32) -> (i32, i32) {
    %c0_i32 = arith.constant 0 : i32
    %c0_i32_0 = arith.constant 0 : i32
    %c0_i32_1 = arith.constant 0 : i32
    return %c0_i32, %c0_i32_0 : i32, i32
  }
  func.func @transform_3(%arg0: i32) -> (i32, i32) {
    %c0_i32 = arith.constant 0 : i32
    %c0_i32_0 = arith.constant 0 : i32
    %c0_i32_1 = arith.constant 0 : i32
    return %c0_i32, %c0_i32_0 : i32, i32
  }
  func.func @transform_4(%arg0: i32) -> (i32, i32) {
    %c0_i32 = arith.constant 0 : i32
    %c0_i32_0 = arith.constant 0 : i32
    %c0_i32_1 = arith.constant 0 : i32
    return %c0_i32, %c0_i32_0 : i32, i32
  }
  func.func @transform_5(%arg0: i32) -> (i32, i32) {
    %c0_i32 = arith.constant 0 : i32
    %c0_i32_0 = arith.constant 0 : i32
    %c0_i32_1 = arith.constant 0 : i32
    return %c0_i32, %c0_i32_0 : i32, i32
  }
  func.func @transform_6(%arg0: i32) -> (i32, i32) {
    %c0_i32 = arith.constant 0 : i32
    %c0_i32_0 = arith.constant 0 : i32
    %c0_i32_1 = arith.constant 0 : i32
    return %c0_i32, %c0_i32_0 : i32, i32
  }
  func.func @transform_7(%arg0: i32) -> (i32, i32) {
    %c0_i32 = arith.constant 0 : i32
    %c0_i32_0 = arith.constant 0 : i32
    %c0_i32_1 = arith.constant 0 : i32
    return %c0_i32, %c0_i32_0 : i32, i32
  }
  func.func @transform_8(%arg0: i32) -> (i32, i32) {
    %c0_i32 = arith.constant 0 : i32
    %c0_i32_0 = arith.constant 0 : i32
    %c0_i32_1 = arith.constant 0 : i32
    return %c0_i32, %c0_i32_0 : i32, i32
  }
  func.func @transform_9(%arg0: i32) -> (i32, i32) {
    %c0_i32 = arith.constant 0 : i32
    %c0_i32_0 = arith.constant 0 : i32
    return %c0_i32, %arg0 : i32, i32
  }
}

</mosaic_0001>

<bundles_post_ra>
// kernel: tpu_custom_call.1
= control target key start
LH: loop header
LB: loop body
LE: loop exit
PB: predicated region body
PF: predicated region fallthrough
CT: control target
= control target key end

     0   :  { %14 = vsyncpa [#allocation4], 0  ;;  %s1264_s0 = inlined_call_operand.vmem [shape: f32[16,256], index: 0, kind: input, shape index: {}]   ;;  %s1265_s1 = inlined_call_operand.vmem [shape: f32[8,16], index: 1, kind: input, shape index: {}]   ;;  %s1266_s2 = inlined_call_operand.vmem [shape: f32[8,1], index: 2, kind: input, shape index: {}]   ;;  %s1267_s3 = inlined_call_operand.vmem [shape: f32[32,8], index: 3, kind: input, shape index: {}]   ;;  %s1268_s4 = inlined_call_operand.vmem [shape: f32[32,1], index: 4, kind: input, shape index: {}]   ;;  %s1269_s5 = inlined_call_operand.vmem [shape: f32[8,32], index: 5, kind: input, shape index: {}]   ;;  %s1270_s6 = inlined_call_operand.vmem [shape: f32[8,1], index: 6, kind: input, shape index: {}]   ;;  %s1271_s7 = inlined_call_operand.vmem [shape: f32[16,8], index: 7, kind: input, shape index: {}]   ;;  %s1272_s8 = inlined_call_operand.vmem [shape: f32[16,1], index: 8, kind: input, shape index: {}]   ;;  %s1273_s9 = inlined_call_operand.hbm [shape: f32[16,256], index: 9, kind: output, shape index: {}]  }
   0x1   :  { %16 = vsyncpa [#allocation4 + $0x1], 0  ;;  %s1089_s30 = smov 0   ;;  %s1091_s10 = smov 0  }
   0x2   :  { %s1093_s11 = smov 0   ;;  %s1095_s12 = smov 0  }
   0x3 LB: > { %s842_s13 = sadd.s32 4294967295, %s1029_s12   ;;  %s843_s14 = sadd.s32 4294967294, %s1029_s12   ;;  %s1029_s12 = sphi %s1095_s12, %s1279_s12   ;;  %s1025_s11 = sphi %s1093_s11, %s1278_s11   ;;  %s1021_s10 = sphi %s1091_s10, %s1277_s10   ;;  %s1017_s30 = sphi %s1089_s30, %s1276_s30  }
   0x4   : > { %s1112_s15 = sadd.s32 1, %s1029_s12   ;;  %s29_s16 = sadd.s32 1, %s1025_s11 }
   0x5   : > { %s26_s17 = ssub.s32 %s1029_s12, %s1112_s15  ;;  %p36_p0 = scmp.ne.s32.totalorder %s1025_s11, %s1021_s10 }
   0x6   : > { %p27_p1 = scmp.eq.s32.totalorder %s26_s17, 0  ;;  %p37_p2 = scmp.eq.s32.totalorder %s1029_s12, 0 }
   0x7   : > { %p234_p3 = scmp.eq.s32.totalorder %s842_s13, 1  ;;  %p239_p4 = scmp.ne.s32.totalorder %s1021_s10, %s1017_s30 }
   0x8   : > { %s1125_s18 = scalar_select %p27_p1, %s1025_s11, %s29_s16  }
   0x9   : > { %p38_p5 = por %p37_p2, %p36_p0  ;;  %p1127_p6 = por %p234_p3, %p36_p0 }
   0xa   : > { %p240_p7 = scmp.eq.s32.totalorder %s843_s14, 1  ;;  %p845_p9 = scmp.ge.s32.totalorder %s1029_s12, 2 }
   0xc   : > { %p1131_p8 = por %p240_p7, %p239_p4  ;;  %280 = sbr.rel (%p845_p9) target bundleno = 26 (0x1a), region = 48 }
  0x13   : > { %283 = sbr.rel (!%p38_p5) target bundleno = 26 (0x1a), region = 52  ;;  %s285_s21 = sand.u32 (%p38_p5), 1, %s1025_s11  }
  0x14   : > { %s847_s22 = sshll.u32 (%p38_p5), %s1029_s12, 3  ;;  %s846_s23 = sshll.u32 (%p38_p5), %s285_s21, 4 }
  0x15   : > { %s289_s26 = scalar_lea.vmem (%p38_p5), %s1264_s0, %s847_s22  ;;  %s287_s27 = scalar_lea.vmem (%p38_p5), [#allocation2], %s846_s23 }
  0x16   : > { %v319_v0 = vld [vmem:[%s289_s26] sm:$0xff] (%p38_p5)  ;;  %v321_v1 = vld [vmem:[%s289_s26 + $0x10] sm:$0xff] (%p38_p5) }
  0x17   : > { %320 = vst [vmem:[%s287_s27] sm:$0xff] (%p38_p5), %v319_v0  ;;  %322 = vst [vmem:[%s287_s27 + $0x8] sm:$0xff] (%p38_p5), %v321_v1 }
  0x1a PF: > { %p848_p10 = scmp.ge.s32.totalorder %s1029_s12, 1  ;;  %p327_p11 = scmp.lt.s32.totalorder %s1029_s12, 3 }
  0x1c   : > { %p328_p12 = pnand %p848_p10, %p327_p11 }
  0x1d   : > { %s334_s28 = sand.u32 (!%p328_p12), 1, %s1021_s10   ;;  %v1031_v2 = vmov (!%p328_p12), 0.0|0.0   ;;  %vm1032_vm0 = vmmov (!%p328_p12), 0   ;;  %v1033_v3 = vmov (!%p328_p12), 0.0   ;;  %v372_v4 = vld [vmem:[%s1266_s2] sm:$0xff] (!%p328_p12)  ;;  %v1034_v5 = vmov (!%p328_p12), 0  }
  0x1e   : > { %331 = sbr.rel (%p328_p12) target bundleno = 931 (0x3a3), region = 90  ;;  %910 = vmatprep.subr.bf16.mxu0 (!%p328_p12), %v1031_v2  ;;  %s1149_s29 = sshll.u32 (!%p328_p12), %s334_s28, 4  ;;  %883 = vmatprep.mubr.msk.f32.mxu0 (!%p328_p12), %vm1032_vm0, %v1033_v3  ;;  %v457_v9 = vld [vmem:[%s1268_s4] sm:$0xff] (!%p328_p12)  ;;  %vm378_vm1 = vcmask (!%p328_p12), 130048   ;;  %v460_v11 = vld [vmem:[%s1268_s4 + $0x18] sm:$0xff] (!%p328_p12)  ;;  %vm481_vm2 = vcmask (!%p328_p12), 64512  }
  0x1f   : > { %965 = vset.pattern.permute.xlu0 (!%p328_p12), %v1034_v5  ;;  %966 = vset.pattern.permute.xlu1 (!%p328_p12), %v1034_v5  ;;  %s336_s17 = scalar_lea.vmem (!%p328_p12), [#allocation2], %s1149_s29  ;;  %v371_v10 = vld [vmem:[%s1265_s1] sm:$0xff] (!%p328_p12)  ;;  %v458_v14 = vld [vmem:[%s1268_s4 + $0x8] sm:$0xff] (!%p328_p12)  ;;  %v459_v15 = vld [vmem:[%s1268_s4 + $0x10] sm:$0xff] (!%p328_p12)  ;;  %vm590_vm3 = vcmask (!%p328_p12), 261120   ;;  %s368_s21 = scalar_lea.vmem (!%p328_p12), [#allocation3], %s1149_s29 }
  0x20   : > { %v369_v6 = vld [vmem:[%s336_s17] sm:$0xff] (!%p328_p12)  ;;  %v370_v7 = vld [vmem:[%s336_s17 + $0x8] sm:$0xff] (!%p328_p12)  ;;  %375 = vperm.xlu0 (!%p328_p12), %965, %v372_v4   ;;  %468 = vperm.xlu1 (!%p328_p12), %966, %v458_v14   ;;  %s775_s22 = sshll.u32 (!%p328_p12), %s368_s21, 4  ;;  %s860_s23 = sshll.u32 (!%p328_p12), %s842_s13, 7  ;;  %s1213_s22 = int_to_ptr.vmem [resolvable:$true] %s775_s22 }
  0x21   : > { %v911_v8 = vpack.c.bf16 (!%p328_p12), %v370_v7, %v369_v6  ;;  %v667_v12 = vld [vmem:[%s1272_s8] sm:$0xff] (!%p328_p12)  ;;  %v668_v17 = vld [vmem:[%s1272_s8 + $0x8] sm:$0xff] (!%p328_p12)  ;;  %v455_v24 = vld [vmem:[%s1267_s3 + $0x10] sm:$0xff] (!%p328_p12)  ;;  %s1218_s26 = scalar_lea.hbm (!%p328_p12), %s1273_s9, %s860_s23  ;;  %s1222_s13 = scalar_lea.sflag (!%p328_p12), [#allocation4], %s334_s28 }
  0x22   : > { %v453_v13 = vld [vmem:[%s1267_s3] sm:$0xff] (!%p328_p12)  ;;  %v454_v23 = vld [vmem:[%s1267_s3 + $0x8] sm:$0xff] (!%p328_p12)  ;;  %v456_v25 = vld [vmem:[%s1267_s3 + $0x18] sm:$0xff] (!%p328_p12)  ;;  %s967_s29 = scalar_lea.vmem (!%p328_p12), %s1213_s22, 256  ;;  %s1035_s27 = smov (!%p328_p12), [#allocation3]  }
  0x23   : > { %912 = vmatpush3.bf16.msra.mxu0 (!%p328_p12), %v911_v8  ;;  %888 = vmatprep.mubr.msk.f32.mxu1 (!%p328_p12), %vm481_vm2, %v453_v13  ;;  %v584_v16 = vld [vmem:[%s1270_s6] sm:$0xff] (!%p328_p12)  ;;  %v666_v51 = vld [vmem:[%s1271_s7 + $0x8] sm:$0xff] (!%p328_p12)  ;;  %p968_p13 = scmp.ne.s32.totalorder (!%p328_p12), %s1213_s22, %s967_s29  ;;  %s971_s14 = sshll.u32 (!%p328_p12), %s1035_s27, 4  ;;  %s972_s14 = int_to_ptr.vmem [resolvable:$false] %s971_s14 }
  0x24   : > { %463 = vperm.xlu0 (!%p328_p12), %965, %v457_v9   ;;  %473 = vperm.xlu1 (!%p328_p12), %966, %v459_v15   ;;  %v583_v44 = vld [vmem:[%s1269_s5] sm:$0xff] (!%p328_p12)  ;;  %s973_s16 = scalar_lea.vmem (!%p328_p12), %s972_s14, 512  ;;  %p974_p2 = scmp.lt.s32.totalorder (!%p328_p12), %s1213_s22, %s972_s14 }
  0x25   : > { %v665_v45 = vld [vmem:[%s1271_s7] sm:$0xff]  ;;  %p969_p0 = pnand %p968_p13, %p1127_p6  ;;  %p975_p3 = scmp.lt.s32.totalorder %s973_s16, %s967_s29 }
  0x26   : > { %884 = vmatmul.mubr.msk.f32.vlgmr.msra.gmra.mrb[0].mxu0 %vm378_vm1, %v371_v10 }
  0x27   : > { %907 = vmatprep.mubr.msk.f32.mxu0 %vm481_vm2, %v665_v45  ;;  %p970_p1 = pneg %p969_p0  ;;  %p976_p4 = por %p975_p3, %p974_p2 }
  0x28   : > { %478 = vperm.xlu0 %965, %v460_v11   ;;  %587 = vperm.xlu1 %966, %v584_v16  }
  0x29   : > { %p977_p5 = pnand %p976_p4, %p970_p1 }
  0x2c   : > { %671 = vperm.xlu0 %965, %v667_v12   ;;  %676 = vperm.xlu1 %966, %v668_v17  }
  0x9f   : > { %v376_v18 = vpop.permute.xlu0 %375  ;;  %v469_v27 = vpop.permute.xlu1 %468 }
  0xa3   : > { %v464_v26 = vpop.permute.xlu0 %463  ;;  %v474_v36 = vpop.permute.xlu1 %473 }
  0xa7   : > { %v479_v33 = vpop.permute.xlu0 %478  ;;  %v588_v46 = vpop.permute.xlu1 %587 }
  0xab   : > { %v677_v52 = vpop.permute.xlu1 %676  ;;  %v672_v54 = vpop.permute.xlu0 %671 }
  0xf9   : > { %v448_v19 = vpop.f32.mrb[0].mxu0 }
  0xfa   : > { %v449_v20 = vadd.f32 %v448_v19, %v376_v18  ;;  %v885_v21 = vpop.f32.mrb[1].mxu0 }
  0xfc   : > { %v452_v22 = vmax.f32 %v449_v20, 0.0 }
  0xfe   : > { %886 = vmatprep.subr.mxu1 %v452_v22 }
  0xff   : > { %887 = vmatpush3.msra.mxu1 %v452_v22 }
 0x100   : > { %889 = vmatmul.mubr.msk.f32.vlgmr.msra.gmra.mrb[0].mxu1 %vm481_vm2, %v454_v23  ;;  %913 = vmatprep.subr.bf16.mxu1 %v1031_v2 }
 0x101   : > { %891 = vmatprep.mubr.msk.f32.mxu1 %vm481_vm2, %v455_v24 }
 0x104   : > { %892 = vmatmul.mubr.msk.f32.gmra.mrb[2].mxu1 %vm481_vm2, %v456_v25 }
 0x105   : > { %902 = vmatprep.mubr.msk.f32.mxu1 %vm1032_vm0, %v1033_v3 }
 0x1d3   : > { %v890_v28 = vpop.f32.mrb[0].mxu1 }
 0x1d4   : > { %v566_v29 = vadd.f32 %v890_v28, %v469_v27  ;;  %v560_v30 = vpop.f32.mrb[1].mxu1 }
 0x1d5   : > { %v561_v31 = vadd.f32 %v560_v30, %v464_v26 }
 0x1d6   : > { %v580_v32 = vmax.f32 %v566_v29, 0.0 }
 0x1d7   : > { %v579_v34 = vmax.f32 %v561_v31, 0.0  ;;  %v893_v35 = vpop.f32.mrb[2].mxu1 }
 0x1d8   : > { %v576_v37 = vadd.f32 %v893_v35, %v479_v33  ;;  %v570_v38 = vpop.f32.mrb[3].mxu1 }
 0x1d9   : > { %v914_v39 = vpack.c.bf16 %v580_v32, %v579_v34  ;;  %v571_v40 = vadd.f32 %v570_v38, %v474_v36 }
 0x1da   : > { %v582_v41 = vmax.f32 %v576_v37, 0.0 }
 0x1db   : > { %v581_v42 = vmax.f32 %v571_v40, 0.0  ;;  %915 = vmatpush3.bf16.msra.mxu1 %v914_v39 }
 0x1dc   : > { %916 = vmatprep.subr.bf16.mxu1 %v1031_v2 }
 0x1dd   : > { %v917_v43 = vpack.c.bf16 %v582_v41, %v581_v42 }
 0x1df   : > { %918 = vmatpush3.bf16.msra.mxu1 %v917_v43 }
 0x1e2   : > { %903 = vmatmul.mubr.msk.f32.vlgmr.msra.gmra.mrb[4].mxu1 %vm590_vm3, %v583_v44 }
 0x2b5   : > { %v660_v47 = vpop.f32.mrb[4].mxu1 }
 0x2b6   : > { %v661_v48 = vadd.f32 %v660_v47, %v588_v46  ;;  %v904_v49 = vpop.f32.mrb[5].mxu1 }
 0x2b8   : > { %v664_v50 = vmax.f32 %v661_v48, 0.0 }
 0x2ba   : > { %905 = vmatprep.subr.mxu0 %v664_v50 }
 0x2bb   : > { %906 = vmatpush3.msra.mxu0 %v664_v50 }
 0x2bc   : > { %908 = vmatmul.mubr.msk.f32.vlgmr.msra.gmra.mrb[2].mxu0 %vm481_vm2, %v666_v51 }
 0x38f   : > { %v909_v53 = vpop.f32.mrb[2].mxu0 }
 0x390   : > { %v757_v55 = vadd.f32 %v909_v53, %v677_v52  ;;  %v751_v56 = vpop.f32.mrb[3].mxu0 }
 0x391   : > { %v752_v57 = vadd.f32 %v751_v56, %v672_v54 }
 0x392   : > { %761 = vst [vmem:[%s368_s21 + $0x8] sm:$0xff] %v757_v55 }
 0x393   : > { %760 = vst [vmem:[%s368_s21] sm:$0xff] %v752_v57 }
 0x394   : > { %980 = shalt.err (!%p977_p5)
}
 0x395   : > { %s981_s28 = scalar_lea.hbm %s1218_s26, 256  ;;  %s985_s23 = scalar_lea.hbm %s1273_s9, 512 }
 0x396   : > { %p982_p7 = scmp.ne.s32.totalorder %s1218_s26, %s981_s28  ;;  %p986_p12 = scmp.lt.u32.totalorder %s1218_s26, %s1273_s9 }
 0x397   : > { %p987_p13 = scmp.lt.u32.totalorder %s985_s23, %s981_s28  ;;  %p989_p1 = scmp.lt.u32.totalorder %s981_s28, %s1218_s26 }
 0x398   : > { %p983_p10 = pnand %p982_p7, %p1127_p6 }
 0x399   : > { %p988_p0 = por %p987_p13, %p986_p12 }
 0x39a   : > { %p984_p11 = pneg %p983_p10 }
 0x39b   : > { %p990_p2 = por %p989_p1, %p988_p0 }
 0x39d   : > { %p991_p3 = pnand %p990_p2, %p984_p11 }
 0x39f   : > { %994 = shalt.err (!%p991_p3)
}
 0x3a0   : > { %s1036_s29 = smov 128   ;;  %s1037_s27 = smov 256  }
 0x3a1   : > { %s1038_s14 = smov 8  }
 0x3a2   : > { %919 = dma.vmem_to_hbm [thread:$0]  (%p1127_p6), %s1213_s22, 256, %s1218_s26, %s1222_s13, %s1036_s29, %s1037_s27, %s1038_s14  }
 0x3a3 PF: > { %s790_s16 = sand.u32 1, %s1017_s30   ;;  %p922_p4 = pnand %p845_p9, %p1131_p8 }
 0x3a4   : > { %s791_s28 = scalar_lea.sflag [#allocation4], %s790_s16 }
 0x3a5   : > { %1012 = dma.done.wait (!%p922_p4), %s791_s28, 256  }
 0x3a6   : > { %1014 = vsyncadd (!%p922_p4), %s791_s28, 4294967040  ;;  %p19_p5 = scmp.ge.s32.totalorder %s1112_s15, 4   ;;  %s1276_s30 = smov %s1021_s10 }
 0x3a7   : > { %s1277_s10 = smov %s1025_s11  ;;  %s1278_s11 = smov %s1125_s18 }
 0x3a8   : > { %s1279_s12 = smov %s1112_s15  ;;  %21 = sbr.rel (!%p19_p5) target bundleno = 3 (0x3), region = 134 }
 0x3af   :  { %796 = vsyncpa [#allocation4], 1 }
 0x3b0   :  { %798 = vsyncpa [#allocation4 + $0x1], 1 }

</bundles_post_ra>
